<compile_context>
chip_gen: v5e
topology: v5e:2x2
jax: 0.10.0
libtpu: 0.0.40
codegen_flags: <defaults>
</compile_context>

<pallas_src>
import functools

import jax
import jax.numpy as jnp
from jax import lax
from jax.experimental import pallas as pl
from jax.experimental.pallas import tpu as pltpu


# ----------------------------------------------------------------------------
# Pallas kernel: whole sequence in one invocation, everything resident.
# ----------------------------------------------------------------------------
def _gru_heads_kernel(
    x_ref,        # (T*Bp, D)   bf16  all timesteps, batch padded to Bp
    w_i_ref,      # (D, 3H)     bf16  fused [W_ir | W_iz | W_in]
    w_h_ref,      # (H, 3H)     bf16  fused [W_hr | W_hz | W_hn]
    b_i_ref,      # (1, 3H)     f32   fused (b_ir+b_hr, b_iz+b_hz, b_in)
    b_hn_ref,     # (1, H)      f32
    w_head_ref,   # (H, Cp)     bf16  fused [W_mean | W_logvar | 0-pad], Cp lane-dense
    b_head_ref,   # (1, Cp)     f32
    out_ref,      # (T*Bp, Cp)  f32   fused mean||logvar(||pad) output slab
    *,
    seq_len,
    batch,
    hidden,
):
    T, Bp, H = seq_len, batch, hidden

    # (1) Hoisted input projection for every timestep in one bf16 MXU pass
    #     (f32 accumulation).  Result stays live in vregs -- no scratch
    #     round-trip -- so later-timestep MXU pops overlap the first steps
    #     of the recurrence.
    xi = (
        jnp.dot(x_ref[...], w_i_ref[...], preferred_element_type=jnp.float32)
        + b_i_ref[...]
    )                                                      # (T*Bp, 3H) f32

    w_h = w_h_ref[...]                                     # (H, 3H) bf16, resident
    b_hn = jnp.broadcast_to(b_hn_ref[...], (Bp, H))        # hoisted broadcast (f32)

    # (2) Serial recurrence, fully unrolled; h and all per-step hidden states
    #     carried in vregs.  PyTorch GRU semantics (gate order r, z, n):
    #       r = sigmoid(xWir + bir + hWhr + bhr)
    #       z = sigmoid(xWiz + biz + hWhz + bhz)
    #       n = tanh   (xWin + bin + r*(hWhn + bhn))
    #       h = (1-z)*n + z*h
    h = jnp.zeros((Bp, H), jnp.float32)
    hs = []
    for t in range(T):
        xi_t = xi[t * Bp:(t + 1) * Bp, :]                  # (Bp, 3H), sublane-aligned
        hh = jnp.dot(h.astype(jnp.bfloat16), w_h,
                     preferred_element_type=jnp.float32)   # (Bp, 3H) f32
        r = jax.nn.sigmoid(xi_t[:, 0:H] + hh[:, 0:H])
        z = jax.nn.sigmoid(xi_t[:, H:2 * H] + hh[:, H:2 * H])
        n = jnp.tanh(xi_t[:, 2 * H:3 * H] + r * (hh[:, 2 * H:3 * H] + b_hn))
        h = (1.0 - z) * n + z * h
        hs.append(h)

    # (3) Both heads fused: one (T*Bp, H) @ (H, Cp) matmul and a single
    #     lane-dense slab store (Cp is a multiple of 128 -> unmasked vst).
    hs_all = jnp.concatenate(hs, axis=0)                   # (T*Bp, H) f32
    out_ref[...] = (
        jnp.dot(hs_all.astype(jnp.bfloat16), w_head_ref[...],
                preferred_element_type=jnp.float32)
        + b_head_ref[...]
    ).astype(out_ref.dtype)


# ----------------------------------------------------------------------------
# One-time parameter fusion (keep OFF the per-call path).
# ----------------------------------------------------------------------------
def fuse_params(params):
    E = params["w_mean"].shape[1]
    w_i = jnp.concatenate([params["w_ir"], params["w_iz"], params["w_in"]], axis=1)   # (D, 3H)
    w_h = jnp.concatenate([params["w_hr"], params["w_hz"], params["w_hn"]], axis=1)   # (H, 3H)
    b_i = jnp.concatenate([params["b_r"], params["b_z"], params["b_in"]], axis=1)     # (1, 3H)
    w_head = jnp.concatenate([params["w_mean"], params["w_lv"]], axis=1)              # (H, 2E)
    b_head = jnp.concatenate([params["b_mean"], params["b_lv"]], axis=1)              # (1, 2E)

    # Pad head columns to a lane-dense multiple of 128 -> unmasked output stores.
    Cp = max(128, ((2 * E + 127) // 128) * 128)
    if Cp != 2 * E:
        w_head = jnp.pad(w_head, ((0, 0), (0, Cp - 2 * E)))
        b_head = jnp.pad(b_head, ((0, 0), (0, Cp - 2 * E)))

    return {
        "w_i": w_i.astype(jnp.bfloat16),
        "w_h": w_h.astype(jnp.bfloat16),
        "b_i": b_i.astype(jnp.float32),
        "b_hn": params["b_hn"].astype(jnp.float32),
        "w_head": w_head.astype(jnp.bfloat16),
        "b_head": b_head.astype(jnp.float32),
    }


# ----------------------------------------------------------------------------
# Jitted wrapper
# ----------------------------------------------------------------------------
@functools.partial(jax.jit, static_argnames=("embed_size",))
def taskid_bisim_encoder_rnn(rnn_output, fused, *, embed_size):
    """rnn_output: (T, B, D) float32. Returns (mean, logvar), each (T, B, embed_size)."""
    T, B, D = rnn_output.shape
    H = fused["w_h"].shape[0]
    Cp = fused["w_head"].shape[1]

    # Pad batch to a multiple of 8 sublanes, flatten time into rows, bf16 MXU operand.
    Bp = max(8, ((B + 7) // 8) * 8)
    x = rnn_output
    if Bp != B:
        x = jnp.pad(x, ((0, 0), (0, Bp - B), (0, 0)))
    x_flat = x.reshape(T * Bp, D).astype(jnp.bfloat16)

    kernel = functools.partial(_gru_heads_kernel, seq_len=T, batch=Bp, hidden=H)

    cost = pl.CostEstimate(
        flops=2 * T * Bp * (D + H) * 3 * H + 2 * T * Bp * H * Cp,
        transcendentals=3 * T * Bp * H,
        bytes_accessed=(
            T * Bp * D * 2                 # x (bf16)
            + (D + H) * 3 * H * 2          # W_i, W_h (bf16)
            + H * Cp * 2                   # W_head (bf16)
            + (3 * H + H + Cp) * 4         # biases (f32)
            + T * Bp * Cp * 4              # output (f32)
        ),
    )

    # TODO(synk): for large T, cap the unroll and stream x/xi via a time grid
    # axis (accumulator pattern, "arbitrary") so the design still fits v7x's
    # 64 MiB VMEM / instruction budget; at these sizes everything fits trivially.
    # TODO(synk): with many independent sequences, add a leading "parallel"
    # grid axis so v7x's second TensorCore takes half of them.
    out = pl.pallas_call(
        kernel,
        out_shape=jax.ShapeDtypeStruct((T * Bp, Cp), jnp.float32),
        in_specs=[pl.BlockSpec(memory_space=pltpu.MemorySpace.VMEM)] * 7,
        out_specs=pl.BlockSpec(memory_space=pltpu.MemorySpace.VMEM),
        cost_estimate=cost,
    )(x_flat, fused["w_i"], fused["w_h"], fused["b_i"], fused["b_hn"],
      fused["w_head"], fused["b_head"])

    out = out.reshape(T, Bp, Cp)[:, :B, :]
    mean = out[..., :embed_size]
    logvar = out[..., embed_size:2 * embed_size]
    return mean, logvar


# ----------------------------------------------------------------------------
# Deterministic parameter init (PyTorch-style uniform bounds)
# ----------------------------------------------------------------------------
def init_params(key, task_embedding_size=32, hidden_dim=64, rnn_output_size=64):
    H, D, E = hidden_dim, rnn_output_size, task_embedding_size
    ks = jax.random.split(key, 16)
    gru_bound = 1.0 / jnp.sqrt(H)
    lin_bound = 1.0 / jnp.sqrt(H)

    def u(k, shape, bound):
        return jax.random.uniform(k, shape, jnp.float32, -bound, bound)

    # GRU weights stored pre-transposed: x @ W_i* and h @ W_h*.
    w_ir, w_iz, w_in = (u(ks[i], (D, H), gru_bound) for i in range(3))
    w_hr, w_hz, w_hn = (u(ks[3 + i], (H, H), gru_bound) for i in range(3))
    # PyTorch has b_ih and b_hh; for r/z they simply add, for n they enter at
    # different places, so keep b_in / b_hn separate.
    b_ir, b_iz, b_in_ = (u(ks[6 + i], (1, H), gru_bound) for i in range(3))
    b_hr, b_hz, b_hn = (u(ks[9 + i], (1, H), gru_bound) for i in range(3))

    w_mean = u(ks[12], (H, E), lin_bound)
    b_mean = u(ks[13], (1, E), lin_bound)
    w_lv = u(ks[14], (H, E), lin_bound)
    b_lv = u(ks[15], (1, E), lin_bound)

    return {
        "w_ir": w_ir, "w_iz": w_iz, "w_in": w_in,
        "w_hr": w_hr, "w_hz": w_hz, "w_hn": w_hn,
        "b_r": b_ir + b_hr, "b_z": b_iz + b_hz, "b_in": b_in_, "b_hn": b_hn,
        "w_mean": w_mean, "b_mean": b_mean,
        "w_lv": w_lv, "b_lv": b_lv,
    }


# ----------------------------------------------------------------------------
# Pure-JAX reference (lax.scan) for the correctness check
# ----------------------------------------------------------------------------
def ref_forward(x, p):
    hp = jax.lax.Precision.HIGHEST

    def step(h, xt):
        r = jax.nn.sigmoid(xt @ p["w_ir"] + h @ p["w_hr"] + p["b_r"])
        z = jax.nn.sigmoid(xt @ p["w_iz"] + h @ p["w_hz"] + p["b_z"])
        n = jnp.tanh(xt @ p["w_in"] + p["b_in"] + r * (h @ p["w_hn"] + p["b_hn"]))
        h_new = (1.0 - z) * n + z * h
        return h_new, h_new

    h0 = jnp.zeros((x.shape[1], p["w_hr"].shape[0]), jnp.float32)
    _, hs = lax.scan(step, h0, x)
    mean = jnp.einsum("tbh,he->tbe", hs, p["w_mean"], precision=hp) + p["b_mean"]
    logvar = jnp.einsum("tbh,he->tbe", hs, p["w_lv"], precision=hp) + p["b_lv"]
    return mean, logvar


if __name__ == "__main__":
    T, B = 8, 4
    task_embedding_size, hidden_dim, rnn_output_size = 32, 64, 64

    key = jax.random.PRNGKey(0)
    k_params, k_x = jax.random.split(key)
    params = init_params(k_params, task_embedding_size, hidden_dim, rnn_output_size)
    fused = fuse_params(params)   # one-time fusion, off the per-call path
    x = jax.random.normal(k_x, (T, B, rnn_output_size), jnp.float32)

    mean, logvar = taskid_bisim_encoder_rnn(x, fused, embed_size=task_embedding_size)
    jax.block_until_ready((mean, logvar))

    mean_ref, logvar_ref = ref_forward(x, params)
    assert mean.shape == (T, B, task_embedding_size)
    assert logvar.shape == (T, B, task_embedding_size)
    # Tolerance covers explicit bf16 MXU operands vs. HIGHEST-precision f32 ref.
    assert jnp.allclose(mean, mean_ref, atol=2e-2, rtol=2e-2)
    assert jnp.allclose(logvar, logvar_ref, atol=2e-2, rtol=2e-2)

    print("KERNEL_OK")
</pallas_src>

<mosaic_0001>
module attributes {stable_mosaic.version = 11 : i64} {
  func.func @_gru_heads_kernel(%arg0: memref<64x64xbf16, #tpu.memory_space<vmem>>, %arg1: memref<64x192xbf16, #tpu.memory_space<vmem>>, %arg2: memref<64x192xbf16, #tpu.memory_space<vmem>>, %arg3: memref<1x192xf32, #tpu.memory_space<vmem>>, %arg4: memref<1x64xf32, #tpu.memory_space<vmem>>, %arg5: memref<64x128xbf16, #tpu.memory_space<vmem>>, %arg6: memref<1x128xf32, #tpu.memory_space<vmem>>, %arg7: memref<64x128xf32, #tpu.memory_space<vmem>>) attributes {dimension_semantics = [], scalar_prefetch = 0 : i64, scratch_operands = 0 : i64, tpu.core_type = #tpu.core_type<tc>} {
    %c0 = arith.constant 0 : index
    %c0_0 = arith.constant 0 : index
    %0 = vector.load %arg0[%c0, %c0_0] : memref<64x64xbf16, #tpu.memory_space<vmem>>, vector<64x64xbf16>
    %c0_1 = arith.constant 0 : index
    %c0_2 = arith.constant 0 : index
    %1 = vector.load %arg1[%c0_1, %c0_2] : memref<64x192xbf16, #tpu.memory_space<vmem>>, vector<64x192xbf16>
    %cst = arith.constant dense<0.000000e+00> : vector<64x192xf32>
    %2 = tpu.matmul %0, %1, %cst {dimension_numbers = #tpu.dot_dimension_numbers<[1], [0], [0], [1], [0, 0, 1, 1], [], []>} : vector<64x64xbf16>, vector<64x192xbf16>, vector<64x192xf32> -> vector<64x192xf32>
    %c0_3 = arith.constant 0 : index
    %c0_4 = arith.constant 0 : index
    %3 = vector.load %arg3[%c0_3, %c0_4] : memref<1x192xf32, #tpu.memory_space<vmem>>, vector<1x192xf32>
    %4 = vector.broadcast %3 : vector<1x192xf32> to vector<64x192xf32>
    %5 = arith.addf %2, %4 : vector<64x192xf32>
    %c0_5 = arith.constant 0 : index
    %c0_6 = arith.constant 0 : index
    %6 = vector.load %arg2[%c0_5, %c0_6] : memref<64x192xbf16, #tpu.memory_space<vmem>>, vector<64x192xbf16>
    %c0_7 = arith.constant 0 : index
    %c0_8 = arith.constant 0 : index
    %7 = vector.load %arg4[%c0_7, %c0_8] : memref<1x64xf32, #tpu.memory_space<vmem>>, vector<1x64xf32>
    %8 = vector.shape_cast %7 : vector<1x64xf32> to vector<1x64xf32>
    %9 = vector.broadcast %8 : vector<1x64xf32> to vector<8x64xf32>
    %cst_9 = arith.constant 0.000000e+00 : f32
    %10 = vector.broadcast %cst_9 : f32 to vector<8x64xf32>
    %11 = vector.extract_strided_slice %5 {offsets = [0, 0], sizes = [8, 192], strides = [1, 1]} : vector<64x192xf32> to vector<8x192xf32>
    %12 = arith.truncf %10 : vector<8x64xf32> to vector<8x64xbf16>
    %cst_10 = arith.constant dense<0.000000e+00> : vector<8x192xf32>
    %13 = tpu.matmul %12, %6, %cst_10 {dimension_numbers = #tpu.dot_dimension_numbers<[1], [0], [0], [1], [0, 0, 1, 1], [], []>} : vector<8x64xbf16>, vector<64x192xbf16>, vector<8x192xf32> -> vector<8x192xf32>
    %14 = vector.extract_strided_slice %11 {offsets = [0, 0], sizes = [8, 64], strides = [1, 1]} : vector<8x192xf32> to vector<8x64xf32>
    %15 = vector.extract_strided_slice %13 {offsets = [0, 0], sizes = [8, 64], strides = [1, 1]} : vector<8x192xf32> to vector<8x64xf32>
    %16 = arith.addf %14, %15 : vector<8x64xf32>
    %17 = arith.negf %16 : vector<8x64xf32>
    %18 = math.exp %17 : vector<8x64xf32>
    %cst_11 = arith.constant 1.000000e+00 : f32
    %19 = vector.broadcast %cst_11 : f32 to vector<8x64xf32>
    %20 = arith.addf %19, %18 : vector<8x64xf32>
    %21 = arith.divf %19, %20 : vector<8x64xf32>
    %22 = vector.extract_strided_slice %11 {offsets = [0, 64], sizes = [8, 64], strides = [1, 1]} : vector<8x192xf32> to vector<8x64xf32>
    %23 = vector.extract_strided_slice %13 {offsets = [0, 64], sizes = [8, 64], strides = [1, 1]} : vector<8x192xf32> to vector<8x64xf32>
    %24 = arith.addf %22, %23 : vector<8x64xf32>
    %25 = arith.negf %24 : vector<8x64xf32>
    %26 = math.exp %25 : vector<8x64xf32>
    %cst_12 = arith.constant 1.000000e+00 : f32
    %27 = vector.broadcast %cst_12 : f32 to vector<8x64xf32>
    %28 = arith.addf %27, %26 : vector<8x64xf32>
    %29 = arith.divf %27, %28 : vector<8x64xf32>
    %30 = vector.extract_strided_slice %11 {offsets = [0, 128], sizes = [8, 64], strides = [1, 1]} : vector<8x192xf32> to vector<8x64xf32>
    %31 = vector.extract_strided_slice %13 {offsets = [0, 128], sizes = [8, 64], strides = [1, 1]} : vector<8x192xf32> to vector<8x64xf32>
    %32 = arith.addf %31, %9 : vector<8x64xf32>
    %33 = arith.mulf %21, %32 : vector<8x64xf32>
    %34 = arith.addf %30, %33 : vector<8x64xf32>
    %35 = math.tanh %34 : vector<8x64xf32>
    %cst_13 = arith.constant 1.000000e+00 : f32
    %36 = vector.broadcast %cst_13 : f32 to vector<8x64xf32>
    %37 = arith.subf %36, %29 : vector<8x64xf32>
    %38 = arith.mulf %37, %35 : vector<8x64xf32>
    %39 = arith.mulf %29, %10 : vector<8x64xf32>
    %40 = arith.addf %38, %39 : vector<8x64xf32>
    %41 = vector.extract_strided_slice %5 {offsets = [8, 0], sizes = [8, 192], strides = [1, 1]} : vector<64x192xf32> to vector<8x192xf32>
    %42 = arith.truncf %40 : vector<8x64xf32> to vector<8x64xbf16>
    %cst_14 = arith.constant dense<0.000000e+00> : vector<8x192xf32>
    %43 = tpu.matmul %42, %6, %cst_14 {dimension_numbers = #tpu.dot_dimension_numbers<[1], [0], [0], [1], [0, 0, 1, 1], [], []>} : vector<8x64xbf16>, vector<64x192xbf16>, vector<8x192xf32> -> vector<8x192xf32>
    %44 = vector.extract_strided_slice %41 {offsets = [0, 0], sizes = [8, 64], strides = [1, 1]} : vector<8x192xf32> to vector<8x64xf32>
    %45 = vector.extract_strided_slice %43 {offsets = [0, 0], sizes = [8, 64], strides = [1, 1]} : vector<8x192xf32> to vector<8x64xf32>
    %46 = arith.addf %44, %45 : vector<8x64xf32>
    %47 = arith.negf %46 : vector<8x64xf32>
    %48 = math.exp %47 : vector<8x64xf32>
    %cst_15 = arith.constant 1.000000e+00 : f32
    %49 = vector.broadcast %cst_15 : f32 to vector<8x64xf32>
    %50 = arith.addf %49, %48 : vector<8x64xf32>
    %51 = arith.divf %49, %50 : vector<8x64xf32>
    %52 = vector.extract_strided_slice %41 {offsets = [0, 64], sizes = [8, 64], strides = [1, 1]} : vector<8x192xf32> to vector<8x64xf32>
    %53 = vector.extract_strided_slice %43 {offsets = [0, 64], sizes = [8, 64], strides = [1, 1]} : vector<8x192xf32> to vector<8x64xf32>
    %54 = arith.addf %52, %53 : vector<8x64xf32>
    %55 = arith.negf %54 : vector<8x64xf32>
    %56 = math.exp %55 : vector<8x64xf32>
    %cst_16 = arith.constant 1.000000e+00 : f32
    %57 = vector.broadcast %cst_16 : f32 to vector<8x64xf32>
    %58 = arith.addf %57, %56 : vector<8x64xf32>
    %59 = arith.divf %57, %58 : vector<8x64xf32>
    %60 = vector.extract_strided_slice %41 {offsets = [0, 128], sizes = [8, 64], strides = [1, 1]} : vector<8x192xf32> to vector<8x64xf32>
    %61 = vector.extract_strided_slice %43 {offsets = [0, 128], sizes = [8, 64], strides = [1, 1]} : vector<8x192xf32> to vector<8x64xf32>
    %62 = arith.addf %61, %9 : vector<8x64xf32>
    %63 = arith.mulf %51, %62 : vector<8x64xf32>
    %64 = arith.addf %60, %63 : vector<8x64xf32>
    %65 = math.tanh %64 : vector<8x64xf32>
    %cst_17 = arith.constant 1.000000e+00 : f32
    %66 = vector.broadcast %cst_17 : f32 to vector<8x64xf32>
    %67 = arith.subf %66, %59 : vector<8x64xf32>
    %68 = arith.mulf %67, %65 : vector<8x64xf32>
    %69 = arith.mulf %59, %40 : vector<8x64xf32>
    %70 = arith.addf %68, %69 : vector<8x64xf32>
    %71 = vector.extract_strided_slice %5 {offsets = [16, 0], sizes = [8, 192], strides = [1, 1]} : vector<64x192xf32> to vector<8x192xf32>
    %72 = arith.truncf %70 : vector<8x64xf32> to vector<8x64xbf16>
    %cst_18 = arith.constant dense<0.000000e+00> : vector<8x192xf32>
    %73 = tpu.matmul %72, %6, %cst_18 {dimension_numbers = #tpu.dot_dimension_numbers<[1], [0], [0], [1], [0, 0, 1, 1], [], []>} : vector<8x64xbf16>, vector<64x192xbf16>, vector<8x192xf32> -> vector<8x192xf32>
    %74 = vector.extract_strided_slice %71 {offsets = [0, 0], sizes = [8, 64], strides = [1, 1]} : vector<8x192xf32> to vector<8x64xf32>
    %75 = vector.extract_strided_slice %73 {offsets = [0, 0], sizes = [8, 64], strides = [1, 1]} : vector<8x192xf32> to vector<8x64xf32>
    %76 = arith.addf %74, %75 : vector<8x64xf32>
    %77 = arith.negf %76 : vector<8x64xf32>
    %78 = math.exp %77 : vector<8x64xf32>
    %cst_19 = arith.constant 1.000000e+00 : f32
    %79 = vector.broadcast %cst_19 : f32 to vector<8x64xf32>
    %80 = arith.addf %79, %78 : vector<8x64xf32>
    %81 = arith.divf %79, %80 : vector<8x64xf32>
    %82 = vector.extract_strided_slice %71 {offsets = [0, 64], sizes = [8, 64], strides = [1, 1]} : vector<8x192xf32> to vector<8x64xf32>
    %83 = vector.extract_strided_slice %73 {offsets = [0, 64], sizes = [8, 64], strides = [1, 1]} : vector<8x192xf32> to vector<8x64xf32>
    %84 = arith.addf %82, %83 : vector<8x64xf32>
    %85 = arith.negf %84 : vector<8x64xf32>
    %86 = math.exp %85 : vector<8x64xf32>
    %cst_20 = arith.constant 1.000000e+00 : f32
    %87 = vector.broadcast %cst_20 : f32 to vector<8x64xf32>
    %88 = arith.addf %87, %86 : vector<8x64xf32>
    %89 = arith.divf %87, %88 : vector<8x64xf32>
    %90 = vector.extract_strided_slice %71 {offsets = [0, 128], sizes = [8, 64], strides = [1, 1]} : vector<8x192xf32> to vector<8x64xf32>
    %91 = vector.extract_strided_slice %73 {offsets = [0, 128], sizes = [8, 64], strides = [1, 1]} : vector<8x192xf32> to vector<8x64xf32>
    %92 = arith.addf %91, %9 : vector<8x64xf32>
    %93 = arith.mulf %81, %92 : vector<8x64xf32>
    %94 = arith.addf %90, %93 : vector<8x64xf32>
    %95 = math.tanh %94 : vector<8x64xf32>
    %cst_21 = arith.constant 1.000000e+00 : f32
    %96 = vector.broadcast %cst_21 : f32 to vector<8x64xf32>
    %97 = arith.subf %96, %89 : vector<8x64xf32>
    %98 = arith.mulf %97, %95 : vector<8x64xf32>
    %99 = arith.mulf %89, %70 : vector<8x64xf32>
    %100 = arith.addf %98, %99 : vector<8x64xf32>
    %101 = vector.extract_strided_slice %5 {offsets = [24, 0], sizes = [8, 192], strides = [1, 1]} : vector<64x192xf32> to vector<8x192xf32>
    %102 = arith.truncf %100 : vector<8x64xf32> to vector<8x64xbf16>
    %cst_22 = arith.constant dense<0.000000e+00> : vector<8x192xf32>
    %103 = tpu.matmul %102, %6, %cst_22 {dimension_numbers = #tpu.dot_dimension_numbers<[1], [0], [0], [1], [0, 0, 1, 1], [], []>} : vector<8x64xbf16>, vector<64x192xbf16>, vector<8x192xf32> -> vector<8x192xf32>
    %104 = vector.extract_strided_slice %101 {offsets = [0, 0], sizes = [8, 64], strides = [1, 1]} : vector<8x192xf32> to vector<8x64xf32>
    %105 = vector.extract_strided_slice %103 {offsets = [0, 0], sizes = [8, 64], strides = [1, 1]} : vector<8x192xf32> to vector<8x64xf32>
    %106 = arith.addf %104, %105 : vector<8x64xf32>
    %107 = arith.negf %106 : vector<8x64xf32>
    %108 = math.exp %107 : vector<8x64xf32>
    %cst_23 = arith.constant 1.000000e+00 : f32
    %109 = vector.broadcast %cst_23 : f32 to vector<8x64xf32>
    %110 = arith.addf %109, %108 : vector<8x64xf32>
    %111 = arith.divf %109, %110 : vector<8x64xf32>
    %112 = vector.extract_strided_slice %101 {offsets = [0, 64], sizes = [8, 64], strides = [1, 1]} : vector<8x192xf32> to vector<8x64xf32>
    %113 = vector.extract_strided_slice %103 {offsets = [0, 64], sizes = [8, 64], strides = [1, 1]} : vector<8x192xf32> to vector<8x64xf32>
    %114 = arith.addf %112, %113 : vector<8x64xf32>
    %115 = arith.negf %114 : vector<8x64xf32>
    %116 = math.exp %115 : vector<8x64xf32>
    %cst_24 = arith.constant 1.000000e+00 : f32
    %117 = vector.broadcast %cst_24 : f32 to vector<8x64xf32>
    %118 = arith.addf %117, %116 : vector<8x64xf32>
    %119 = arith.divf %117, %118 : vector<8x64xf32>
    %120 = vector.extract_strided_slice %101 {offsets = [0, 128], sizes = [8, 64], strides = [1, 1]} : vector<8x192xf32> to vector<8x64xf32>
    %121 = vector.extract_strided_slice %103 {offsets = [0, 128], sizes = [8, 64], strides = [1, 1]} : vector<8x192xf32> to vector<8x64xf32>
    %122 = arith.addf %121, %9 : vector<8x64xf32>
    %123 = arith.mulf %111, %122 : vector<8x64xf32>
    %124 = arith.addf %120, %123 : vector<8x64xf32>
    %125 = math.tanh %124 : vector<8x64xf32>
    %cst_25 = arith.constant 1.000000e+00 : f32
    %126 = vector.broadcast %cst_25 : f32 to vector<8x64xf32>
    %127 = arith.subf %126, %119 : vector<8x64xf32>
    %128 = arith.mulf %127, %125 : vector<8x64xf32>
    %129 = arith.mulf %119, %100 : vector<8x64xf32>
    %130 = arith.addf %128, %129 : vector<8x64xf32>
    %131 = vector.extract_strided_slice %5 {offsets = [32, 0], sizes = [8, 192], strides = [1, 1]} : vector<64x192xf32> to vector<8x192xf32>
    %132 = arith.truncf %130 : vector<8x64xf32> to vector<8x64xbf16>
    %cst_26 = arith.constant dense<0.000000e+00> : vector<8x192xf32>
    %133 = tpu.matmul %132, %6, %cst_26 {dimension_numbers = #tpu.dot_dimension_numbers<[1], [0], [0], [1], [0, 0, 1, 1], [], []>} : vector<8x64xbf16>, vector<64x192xbf16>, vector<8x192xf32> -> vector<8x192xf32>
    %134 = vector.extract_strided_slice %131 {offsets = [0, 0], sizes = [8, 64], strides = [1, 1]} : vector<8x192xf32> to vector<8x64xf32>
    %135 = vector.extract_strided_slice %133 {offsets = [0, 0], sizes = [8, 64], strides = [1, 1]} : vector<8x192xf32> to vector<8x64xf32>
    %136 = arith.addf %134, %135 : vector<8x64xf32>
    %137 = arith.negf %136 : vector<8x64xf32>
    %138 = math.exp %137 : vector<8x64xf32>
    %cst_27 = arith.constant 1.000000e+00 : f32
    %139 = vector.broadcast %cst_27 : f32 to vector<8x64xf32>
    %140 = arith.addf %139, %138 : vector<8x64xf32>
    %141 = arith.divf %139, %140 : vector<8x64xf32>
    %142 = vector.extract_strided_slice %131 {offsets = [0, 64], sizes = [8, 64], strides = [1, 1]} : vector<8x192xf32> to vector<8x64xf32>
    %143 = vector.extract_strided_slice %133 {offsets = [0, 64], sizes = [8, 64], strides = [1, 1]} : vector<8x192xf32> to vector<8x64xf32>
    %144 = arith.addf %142, %143 : vector<8x64xf32>
    %145 = arith.negf %144 : vector<8x64xf32>
    %146 = math.exp %145 : vector<8x64xf32>
    %cst_28 = arith.constant 1.000000e+00 : f32
    %147 = vector.broadcast %cst_28 : f32 to vector<8x64xf32>
    %148 = arith.addf %147, %146 : vector<8x64xf32>
    %149 = arith.divf %147, %148 : vector<8x64xf32>
    %150 = vector.extract_strided_slice %131 {offsets = [0, 128], sizes = [8, 64], strides = [1, 1]} : vector<8x192xf32> to vector<8x64xf32>
    %151 = vector.extract_strided_slice %133 {offsets = [0, 128], sizes = [8, 64], strides = [1, 1]} : vector<8x192xf32> to vector<8x64xf32>
    %152 = arith.addf %151, %9 : vector<8x64xf32>
    %153 = arith.mulf %141, %152 : vector<8x64xf32>
    %154 = arith.addf %150, %153 : vector<8x64xf32>
    %155 = math.tanh %154 : vector<8x64xf32>
    %cst_29 = arith.constant 1.000000e+00 : f32
    %156 = vector.broadcast %cst_29 : f32 to vector<8x64xf32>
    %157 = arith.subf %156, %149 : vector<8x64xf32>
    %158 = arith.mulf %157, %155 : vector<8x64xf32>
    %159 = arith.mulf %149, %130 : vector<8x64xf32>
    %160 = arith.addf %158, %159 : vector<8x64xf32>
    %161 = vector.extract_strided_slice %5 {offsets = [40, 0], sizes = [8, 192], strides = [1, 1]} : vector<64x192xf32> to vector<8x192xf32>
    %162 = arith.truncf %160 : vector<8x64xf32> to vector<8x64xbf16>
    %cst_30 = arith.constant dense<0.000000e+00> : vector<8x192xf32>
    %163 = tpu.matmul %162, %6, %cst_30 {dimension_numbers = #tpu.dot_dimension_numbers<[1], [0], [0], [1], [0, 0, 1, 1], [], []>} : vector<8x64xbf16>, vector<64x192xbf16>, vector<8x192xf32> -> vector<8x192xf32>
    %164 = vector.extract_strided_slice %161 {offsets = [0, 0], sizes = [8, 64], strides = [1, 1]} : vector<8x192xf32> to vector<8x64xf32>
    %165 = vector.extract_strided_slice %163 {offsets = [0, 0], sizes = [8, 64], strides = [1, 1]} : vector<8x192xf32> to vector<8x64xf32>
    %166 = arith.addf %164, %165 : vector<8x64xf32>
    %167 = arith.negf %166 : vector<8x64xf32>
    %168 = math.exp %167 : vector<8x64xf32>
    %cst_31 = arith.constant 1.000000e+00 : f32
    %169 = vector.broadcast %cst_31 : f32 to vector<8x64xf32>
    %170 = arith.addf %169, %168 : vector<8x64xf32>
    %171 = arith.divf %169, %170 : vector<8x64xf32>
    %172 = vector.extract_strided_slice %161 {offsets = [0, 64], sizes = [8, 64], strides = [1, 1]} : vector<8x192xf32> to vector<8x64xf32>
    %173 = vector.extract_strided_slice %163 {offsets = [0, 64], sizes = [8, 64], strides = [1, 1]} : vector<8x192xf32> to vector<8x64xf32>
    %174 = arith.addf %172, %173 : vector<8x64xf32>
    %175 = arith.negf %174 : vector<8x64xf32>
    %176 = math.exp %175 : vector<8x64xf32>
    %cst_32 = arith.constant 1.000000e+00 : f32
    %177 = vector.broadcast %cst_32 : f32 to vector<8x64xf32>
    %178 = arith.addf %177, %176 : vector<8x64xf32>
    %179 = arith.divf %177, %178 : vector<8x64xf32>
    %180 = vector.extract_strided_slice %161 {offsets = [0, 128], sizes = [8, 64], strides = [1, 1]} : vector<8x192xf32> to vector<8x64xf32>
    %181 = vector.extract_strided_slice %163 {offsets = [0, 128], sizes = [8, 64], strides = [1, 1]} : vector<8x192xf32> to vector<8x64xf32>
    %182 = arith.addf %181, %9 : vector<8x64xf32>
    %183 = arith.mulf %171, %182 : vector<8x64xf32>
    %184 = arith.addf %180, %183 : vector<8x64xf32>
    %185 = math.tanh %184 : vector<8x64xf32>
    %cst_33 = arith.constant 1.000000e+00 : f32
    %186 = vector.broadcast %cst_33 : f32 to vector<8x64xf32>
    %187 = arith.subf %186, %179 : vector<8x64xf32>
    %188 = arith.mulf %187, %185 : vector<8x64xf32>
    %189 = arith.mulf %179, %160 : vector<8x64xf32>
    %190 = arith.addf %188, %189 : vector<8x64xf32>
    %191 = vector.extract_strided_slice %5 {offsets = [48, 0], sizes = [8, 192], strides = [1, 1]} : vector<64x192xf32> to vector<8x192xf32>
    %192 = arith.truncf %190 : vector<8x64xf32> to vector<8x64xbf16>
    %cst_34 = arith.constant dense<0.000000e+00> : vector<8x192xf32>
    %193 = tpu.matmul %192, %6, %cst_34 {dimension_numbers = #tpu.dot_dimension_numbers<[1], [0], [0], [1], [0, 0, 1, 1], [], []>} : vector<8x64xbf16>, vector<64x192xbf16>, vector<8x192xf32> -> vector<8x192xf32>
    %194 = vector.extract_strided_slice %191 {offsets = [0, 0], sizes = [8, 64], strides = [1, 1]} : vector<8x192xf32> to vector<8x64xf32>
    %195 = vector.extract_strided_slice %193 {offsets = [0, 0], sizes = [8, 64], strides = [1, 1]} : vector<8x192xf32> to vector<8x64xf32>
    %196 = arith.addf %194, %195 : vector<8x64xf32>
    %197 = arith.negf %196 : vector<8x64xf32>
    %198 = math.exp %197 : vector<8x64xf32>
    %cst_35 = arith.constant 1.000000e+00 : f32
    %199 = vector.broadcast %cst_35 : f32 to vector<8x64xf32>
    %200 = arith.addf %199, %198 : vector<8x64xf32>
    %201 = arith.divf %199, %200 : vector<8x64xf32>
    %202 = vector.extract_strided_slice %191 {offsets = [0, 64], sizes = [8, 64], strides = [1, 1]} : vector<8x192xf32> to vector<8x64xf32>
    %203 = vector.extract_strided_slice %193 {offsets = [0, 64], sizes = [8, 64], strides = [1, 1]} : vector<8x192xf32> to vector<8x64xf32>
    %204 = arith.addf %202, %203 : vector<8x64xf32>
    %205 = arith.negf %204 : vector<8x64xf32>
    %206 = math.exp %205 : vector<8x64xf32>
    %cst_36 = arith.constant 1.000000e+00 : f32
    %207 = vector.broadcast %cst_36 : f32 to vector<8x64xf32>
    %208 = arith.addf %207, %206 : vector<8x64xf32>
    %209 = arith.divf %207, %208 : vector<8x64xf32>
    %210 = vector.extract_strided_slice %191 {offsets = [0, 128], sizes = [8, 64], strides = [1, 1]} : vector<8x192xf32> to vector<8x64xf32>
    %211 = vector.extract_strided_slice %193 {offsets = [0, 128], sizes = [8, 64], strides = [1, 1]} : vector<8x192xf32> to vector<8x64xf32>
    %212 = arith.addf %211, %9 : vector<8x64xf32>
    %213 = arith.mulf %201, %212 : vector<8x64xf32>
    %214 = arith.addf %210, %213 : vector<8x64xf32>
    %215 = math.tanh %214 : vector<8x64xf32>
    %cst_37 = arith.constant 1.000000e+00 : f32
    %216 = vector.broadcast %cst_37 : f32 to vector<8x64xf32>
    %217 = arith.subf %216, %209 : vector<8x64xf32>
    %218 = arith.mulf %217, %215 : vector<8x64xf32>
    %219 = arith.mulf %209, %190 : vector<8x64xf32>
    %220 = arith.addf %218, %219 : vector<8x64xf32>
    %221 = vector.extract_strided_slice %5 {offsets = [56, 0], sizes = [8, 192], strides = [1, 1]} : vector<64x192xf32> to vector<8x192xf32>
    %222 = arith.truncf %220 : vector<8x64xf32> to vector<8x64xbf16>
    %cst_38 = arith.constant dense<0.000000e+00> : vector<8x192xf32>
    %223 = tpu.matmul %222, %6, %cst_38 {dimension_numbers = #tpu.dot_dimension_numbers<[1], [0], [0], [1], [0, 0, 1, 1], [], []>} : vector<8x64xbf16>, vector<64x192xbf16>, vector<8x192xf32> -> vector<8x192xf32>
    %224 = vector.extract_strided_slice %221 {offsets = [0, 0], sizes = [8, 64], strides = [1, 1]} : vector<8x192xf32> to vector<8x64xf32>
    %225 = vector.extract_strided_slice %223 {offsets = [0, 0], sizes = [8, 64], strides = [1, 1]} : vector<8x192xf32> to vector<8x64xf32>
    %226 = arith.addf %224, %225 : vector<8x64xf32>
    %227 = arith.negf %226 : vector<8x64xf32>
    %228 = math.exp %227 : vector<8x64xf32>
    %cst_39 = arith.constant 1.000000e+00 : f32
    %229 = vector.broadcast %cst_39 : f32 to vector<8x64xf32>
    %230 = arith.addf %229, %228 : vector<8x64xf32>
    %231 = arith.divf %229, %230 : vector<8x64xf32>
    %232 = vector.extract_strided_slice %221 {offsets = [0, 64], sizes = [8, 64], strides = [1, 1]} : vector<8x192xf32> to vector<8x64xf32>
    %233 = vector.extract_strided_slice %223 {offsets = [0, 64], sizes = [8, 64], strides = [1, 1]} : vector<8x192xf32> to vector<8x64xf32>
    %234 = arith.addf %232, %233 : vector<8x64xf32>
    %235 = arith.negf %234 : vector<8x64xf32>
    %236 = math.exp %235 : vector<8x64xf32>
    %cst_40 = arith.constant 1.000000e+00 : f32
    %237 = vector.broadcast %cst_40 : f32 to vector<8x64xf32>
    %238 = arith.addf %237, %236 : vector<8x64xf32>
    %239 = arith.divf %237, %238 : vector<8x64xf32>
    %240 = vector.extract_strided_slice %221 {offsets = [0, 128], sizes = [8, 64], strides = [1, 1]} : vector<8x192xf32> to vector<8x64xf32>
    %241 = vector.extract_strided_slice %223 {offsets = [0, 128], sizes = [8, 64], strides = [1, 1]} : vector<8x192xf32> to vector<8x64xf32>
    %242 = arith.addf %241, %9 : vector<8x64xf32>
    %243 = arith.mulf %231, %242 : vector<8x64xf32>
    %244 = arith.addf %240, %243 : vector<8x64xf32>
    %245 = math.tanh %244 : vector<8x64xf32>
    %cst_41 = arith.constant 1.000000e+00 : f32
    %246 = vector.broadcast %cst_41 : f32 to vector<8x64xf32>
    %247 = arith.subf %246, %239 : vector<8x64xf32>
    %248 = arith.mulf %247, %245 : vector<8x64xf32>
    %249 = arith.mulf %239, %220 : vector<8x64xf32>
    %250 = arith.addf %248, %249 : vector<8x64xf32>
    %251 = tpu.concatenate %40, %70, %100, %130, %160, %190, %220, %250 in 0 : vector<8x64xf32>, vector<8x64xf32>, vector<8x64xf32>, vector<8x64xf32>, vector<8x64xf32>, vector<8x64xf32>, vector<8x64xf32>, vector<8x64xf32> -> vector<64x64xf32>
    %252 = arith.truncf %251 : vector<64x64xf32> to vector<64x64xbf16>
    %c0_42 = arith.constant 0 : index
    %c0_43 = arith.constant 0 : index
    %253 = vector.load %arg5[%c0_42, %c0_43] : memref<64x128xbf16, #tpu.memory_space<vmem>>, vector<64x128xbf16>
    %cst_44 = arith.constant dense<0.000000e+00> : vector<64x128xf32>
    %254 = tpu.matmul %252, %253, %cst_44 {dimension_numbers = #tpu.dot_dimension_numbers<[1], [0], [0], [1], [0, 0, 1, 1], [], []>} : vector<64x64xbf16>, vector<64x128xbf16>, vector<64x128xf32> -> vector<64x128xf32>
    %c0_45 = arith.constant 0 : index
    %c0_46 = arith.constant 0 : index
    %255 = vector.load %arg6[%c0_45, %c0_46] : memref<1x128xf32, #tpu.memory_space<vmem>>, vector<1x128xf32>
    %256 = vector.broadcast %255 : vector<1x128xf32> to vector<64x128xf32>
    %257 = arith.addf %254, %256 : vector<64x128xf32>
    %c0_47 = arith.constant 0 : index
    %c0_48 = arith.constant 0 : index
    %258 = vector.load %arg7[%c0_47, %c0_48] : memref<64x128xf32, #tpu.memory_space<vmem>>, vector<64x128xf32>
    tpu.vector_store %arg7[%c0_47, %c0_48], %257 {strides = array<i32>} : memref<64x128xf32, #tpu.memory_space<vmem>>, vector<64x128xf32>,
    return
  }
}

</mosaic_0001>

<bundles_post_ra>
// kernel: taskid_bisim_encoder_rnn.1
= control target key start
LH: loop header
LB: loop body
LE: loop exit
PB: predicated region body
PF: predicated region fallthrough
CT: control target
= control target key end

     0   :  { %12 = vsyncpa [#allocation3], 0  ;;  %s1117_s27 = smov [#allocation2]   ;;  %s1118_s29 = smov 128   ;;  %s1498_s0 = inlined_call_operand.vmem [shape: bf16[64,64], index: 0, kind: input, shape index: {}]   ;;  %s1499_s1 = inlined_call_operand.vmem [shape: bf16[64,192], index: 1, kind: input, shape index: {}]   ;;  %s1500_s2 = inlined_call_operand.hbm [shape: bf16[64,192], index: 2, kind: input, shape index: {}]   ;;  %s1501_s3 = inlined_call_operand.vmem [shape: f32[1,192], index: 3, kind: input, shape index: {}]   ;;  %s1502_s4 = inlined_call_operand.vmem [shape: f32[1,64], index: 4, kind: input, shape index: {}]   ;;  %s1503_s5 = inlined_call_operand.vmem [shape: bf16[64,128], index: 5, kind: input, shape index: {}]   ;;  %s1504_s6 = inlined_call_operand.vmem [shape: f32[1,128], index: 6, kind: input, shape index: {}]   ;;  %s1505_s7 = inlined_call_operand.vmem [shape: f32[64,128], index: 7, kind: output, shape index: {}]  }
   0x1   :  { %s21_s26 = sshll.u32 %s1500_s2, 4  ;;  %s23_s28 = sshll.u32 %s1117_s27, 4  ;;  %s22_s26 = int_to_ptr.hbm [resolvable:$true] %s21_s26  ;;  %s24_s28 = int_to_ptr.vmem [resolvable:$true] %s23_s28 }
   0x2   :  { %s1119_s30 = smov 8  }
   0x3   :  { %29 = dma.hbm_to_vmem [thread:$0]  %s22_s26, 1024, %s24_s28, [#allocation3], %s1118_s29, %s1118_s29, %s1119_s30  }
   0x4   :  { %1115 = dma.done.wait [#allocation3], 1024  }
   0x5   :  { %1116 = vsyncadd [#allocation3], 4294966272  ;;  %v912_v0 = vld [vmem:[%s1499_s1 + $0x30] sm:$0xf]  ;;  %v1011_v1 = vld [vmem:[%s1499_s1 + $0x34] sm:$0xf0] }
   0x6   :  { %v904_v2 = vld [vmem:[%s1499_s1 + $0x20] sm:$0xf]  ;;  %v913_v3 = vor.u32 %v1011_v1, %v912_v0  ;;  %v1009_v4 = vld [vmem:[%s1499_s1 + $0x24] sm:$0xf0]  ;;  %v896_v6 = vld [vmem:[%s1499_s1 + $0x10] sm:$0xf] }
   0x7   :  { %v905_v5 = vor.u32 %v1009_v4, %v904_v2  ;;  %v1007_v7 = vld [vmem:[%s1499_s1 + $0x14] sm:$0xf0]  ;;  %v888_v9 = vld [vmem:[%s1499_s1] sm:$0xf]  ;;  %v1005_v10 = vld [vmem:[%s1499_s1 + $0x4] sm:$0xf0] }
   0x8   :  { %1025 = vmatpush.bf16.msra.mxu2 %v913_v3  ;;  %142 = vmatpush.bf16.msra.mxu0 %v913_v3  ;;  %v897_v8 = vor.u32 %v1007_v7, %v896_v6  ;;  %v952_v11 = vld [vmem:[#allocation2 + $0x30] sm:$0xf]  ;;  %v1019_v12 = vld [vmem:[#allocation2 + $0x34] sm:$0xf0]  ;;  %v1018_v13 = vld [vmem:[#allocation2 + $0x34] sm:$0xf]  ;;  %v889_v15 = vor.u32 %v1005_v10, %v888_v9 }
   0x9   :  { %1026 = vmatpush.bf16.msra.mxu3 %v913_v3  ;;  %1024 = vmatpush.bf16.msra.mxu1 %v913_v3  ;;  %v954_v14 = vld [vmem:[#allocation2 + $0x38] sm:$0xf0]  ;;  %v1010_v16 = vld [vmem:[%s1499_s1 + $0x34] sm:$0xf]  ;;  %v1192_v17 = vor.u32 %v1019_v12, %v952_v11  ;;  %v944_v20 = vld [vmem:[#allocation2 + $0x20] sm:$0xf] }
   0xa   :  { %v914_v18 = vld [vmem:[%s1499_s1 + $0x38] sm:$0xf0]  ;;  %v1200_v19 = vld [vmem:[%s1498_s0 + $0x10] sm:$0xff]  ;;  %v1017_v21 = vld [vmem:[#allocation2 + $0x24] sm:$0xf0]  ;;  %v1202_v22 = vor.u32 %v1018_v13, %v954_v14  ;;  %vm125_vm0 = vcmask 523264  }
   0xb   :  { %v1000_v23 = vld [vmem:[%s1498_s0] sm:$0xff]  ;;  %v946_v25 = vld [vmem:[#allocation2 + $0x28] sm:$0xf0]  ;;  %v1210_v26 = vld [vmem:[%s1498_s0 + $0x18] sm:$0xff]  ;;  %v917_v27 = vor.u32 %v1010_v16, %v914_v18  ;;  %v1213_v28 = vor.u32 %v1017_v21, %v944_v20  ;;  %v1120_v52 = vmov 0  }
   0xc   :  { %1028 = vmatpush.bf16.msra.mxu2 %v905_v5  ;;  %143 = vmatpush.bf16.msra.mxu0 %v905_v5  ;;  %v1016_v24 = vld [vmem:[#allocation2 + $0x24] sm:$0xf]  ;;  %v1218_v29 = vld [vmem:[%s1498_s0 + $0x8] sm:$0xff]  ;;  %v936_v32 = vld [vmem:[#allocation2 + $0x10] sm:$0xf] }
   0xd   :  { %1029 = vmatpush.bf16.msra.mxu3 %v905_v5  ;;  %1027 = vmatpush.bf16.msra.mxu1 %v905_v5  ;;  %v1008_v30 = vld [vmem:[%s1499_s1 + $0x24] sm:$0xf]  ;;  %v906_v31 = vld [vmem:[%s1499_s1 + $0x28] sm:$0xf0]  ;;  %v1015_v33 = vld [vmem:[#allocation2 + $0x14] sm:$0xf0]  ;;  %v1227_v34 = vor.u32 %v1016_v24, %v946_v25 }
   0xe   :  { %v1014_v35 = vld [vmem:[#allocation2 + $0x14] sm:$0xf]  ;;  %v938_v36 = vld [vmem:[#allocation2 + $0x18] sm:$0xf0]  ;;  %v909_v37 = vor.u32 %v1008_v30, %v906_v31  ;;  %v1235_v38 = vor.u32 %v1015_v33, %v936_v32  ;;  %v928_v41 = vld [vmem:[#allocation2] sm:$0xf] }
   0xf   :  { %v1006_v39 = vld [vmem:[%s1499_s1 + $0x14] sm:$0xf]  ;;  %v898_v40 = vld [vmem:[%s1499_s1 + $0x18] sm:$0xf0]  ;;  %v1013_v42 = vld [vmem:[#allocation2 + $0x4] sm:$0xf0]  ;;  %v1246_v43 = vor.u32 %v1014_v35, %v938_v36 }
  0x10   :  { %1031 = vmatpush.bf16.msra.mxu2 %v897_v8  ;;  %144 = vmatpush.bf16.msra.mxu0 %v897_v8  ;;  %v1012_v44 = vld [vmem:[#allocation2 + $0x4] sm:$0xf]  ;;  %v930_v45 = vld [vmem:[#allocation2 + $0x8] sm:$0xf0]  ;;  %v901_v46 = vor.u32 %v1006_v39, %v898_v40  ;;  %v1250_v47 = vor.u32 %v1013_v42, %v928_v41  ;;  %v59_v53 = vld [vmem:[%s1501_s3] sm:$0x3] }
  0x11   :  { %1032 = vmatpush.bf16.msra.mxu3 %v897_v8  ;;  %1030 = vmatpush.bf16.msra.mxu1 %v897_v8  ;;  %v1004_v48 = vld [vmem:[%s1499_s1 + $0x4] sm:$0xf]  ;;  %v890_v49 = vld [vmem:[%s1499_s1 + $0x8] sm:$0xf0]  ;;  %v1259_v50 = vor.u32 %v1012_v44, %v930_v45  ;;  %v1304_v55 = vperm.slane %v59_v53, 0  ;;  %v1330_v21 = vperm.slane %v59_v53, 1 }
  0x12   :  { %v893_v51 = vor.u32 %v1004_v48, %v890_v49 }
  0x14   :  { %1034 = vmatpush.bf16.msra.mxu2 %v889_v15  ;;  %145 = vmatpush.bf16.msra.mxu0 %v889_v15 }
  0x15   :  { %1035 = vmatpush.bf16.msra.mxu3 %v889_v15  ;;  %1033 = vmatpush.bf16.msra.mxu1 %v889_v15  ;;  %v1328_v15 = vld [vmem:[%s1502_s4] ss:$0 sm:$0xff]  ;;  %s1121_s4 = smov 64  }
  0x17   :  { %920 = vmatmul.msk.bf16.vlgmr.msra.gmra.mxu2 %vm125_vm0, %v1200_v19  ;;  %918 = vmatmul.msk.bf16.vlgmr.msra.gmra.mxu0 %vm125_vm0, %v1000_v23 }
  0x18   :  { %255 = vmatpush.bf16.msrb.mxu2 %v1192_v17  ;;  %921 = vmatmul.msk.bf16.vlgmr.msra.gmra.mxu3 %vm125_vm0, %v1210_v26 }
  0x19   :  { %268 = vmatpush.bf16.msrb.mxu3 %v1202_v22  ;;  %171 = vmatpush.bf16.msrb.mxu1 %v917_v27 }
  0x1a   :  { %919 = vmatmul.msk.bf16.vlgmr.msra.gmra.mxu1 %vm125_vm0, %v1218_v29  ;;  %515 = vmatpush.bf16.msrb.mxu0 %v1192_v17 }
  0x1c   :  { %256 = vmatpush.bf16.msrb.mxu2 %v1213_v28 }
  0x1d   :  { %269 = vmatpush.bf16.msrb.mxu3 %v1227_v34  ;;  %172 = vmatpush.bf16.msrb.mxu1 %v909_v37 }
  0x1e   :  { %516 = vmatpush.bf16.msrb.mxu0 %v1213_v28 }
  0x20   :  { %257 = vmatpush.bf16.msrb.mxu2 %v1235_v38 }
  0x21   :  { %270 = vmatpush.bf16.msrb.mxu3 %v1246_v43  ;;  %173 = vmatpush.bf16.msrb.mxu1 %v901_v46 }
  0x22   :  { %517 = vmatpush.bf16.msrb.mxu0 %v1235_v38 }
  0x24   :  { %258 = vmatpush.bf16.msrb.mxu2 %v1250_v47 }
  0x25   :  { %271 = vmatpush.bf16.msrb.mxu3 %v1259_v50  ;;  %174 = vmatpush.bf16.msrb.mxu1 %v893_v51 }
  0x26   :  { %518 = vmatpush.bf16.msrb.mxu0 %v1250_v47 }
  0x27   :  { %259 = vmatmul.bf16.vlgmr.msrb.gmra.mxu2 %v1120_v52 }
  0x28   :  { %320 = vmatpush.bf16.msra.mxu2 %v1192_v17  ;;  %272 = vmatmul.bf16.vlgmr.msrb.gmra.mxu3 %v1120_v52 }
  0x29   :  { %333 = vmatpush.bf16.msra.mxu3 %v1202_v22  ;;  %528 = vmatpush.bf16.msra.mxu1 %v1202_v22 }
  0x2a   :  { %922 = vmatmul.msk.bf16.vlgmr.msrb.gmra.mxu1 %vm125_vm0, %v1000_v23  ;;  %645 = vmatpush.bf16.msra.mxu0 %v1192_v17 }
  0x2c   :  { %321 = vmatpush.bf16.msra.mxu2 %v1213_v28 }
  0x2d   :  { %334 = vmatpush.bf16.msra.mxu3 %v1227_v34  ;;  %529 = vmatpush.bf16.msra.mxu1 %v1227_v34 }
  0x2e   :  { %646 = vmatpush.bf16.msra.mxu0 %v1213_v28 }
  0x30   :  { %322 = vmatpush.bf16.msra.mxu2 %v1235_v38 }
  0x31   :  { %335 = vmatpush.bf16.msra.mxu3 %v1246_v43  ;;  %530 = vmatpush.bf16.msra.mxu1 %v1246_v43 }
  0x32   :  { %647 = vmatpush.bf16.msra.mxu0 %v1235_v38 }
  0x34   :  { %323 = vmatpush.bf16.msra.mxu2 %v1250_v47 }
  0x35   :  { %336 = vmatpush.bf16.msra.mxu3 %v1259_v50  ;;  %531 = vmatpush.bf16.msra.mxu1 %v1259_v50 }
  0x36   :  { %648 = vmatpush.bf16.msra.mxu0 %v1250_v47 }
  0x38   :  { %385 = vmatpush.bf16.msrb.mxu2 %v1192_v17 }
  0x39   :  { %398 = vmatpush.bf16.msrb.mxu3 %v1202_v22  ;;  %658 = vmatpush.bf16.msrb.mxu1 %v1202_v22 }
  0x3a   :  { %923 = vmatmul.msk.bf16.gmra.mxu1 %vm125_vm0, %v1218_v29 }
  0x3c   :  { %386 = vmatpush.bf16.msrb.mxu2 %v1213_v28 }
  0x3d   :  { %399 = vmatpush.bf16.msrb.mxu3 %v1227_v34  ;;  %659 = vmatpush.bf16.msrb.mxu1 %v1227_v34 }
  0x40   :  { %387 = vmatpush.bf16.msrb.mxu2 %v1235_v38 }
  0x41   :  { %400 = vmatpush.bf16.msrb.mxu3 %v1246_v43  ;;  %660 = vmatpush.bf16.msrb.mxu1 %v1246_v43 }
  0x44   :  { %388 = vmatpush.bf16.msrb.mxu2 %v1250_v47 }
  0x45   :  { %401 = vmatpush.bf16.msrb.mxu3 %v1259_v50  ;;  %661 = vmatpush.bf16.msrb.mxu1 %v1259_v50 }
  0x4a   :  { %924 = vmatmul.msk.bf16.gmra.mxu1 %vm125_vm0, %v1200_v19 }
  0x5a   :  { %925 = vmatmul.msk.bf16.gmra.mxu1 %vm125_vm0, %v1210_v26 }
  0x94   :  { %v147_v3 = vpop.f32.mrf.mxu0 }
  0x95   :  { %v148_v4 = vadd.f32 %v147_v3, %v1304_v55 }
  0x97   :  { %v152_v54 = vpop.f32.mrf.mxu1 }
  0x98   :  { %v1307_v56 = vadd.f32 %v152_v54, %v1304_v55 }
  0x9a   :  { %v157_v57 = vpop.f32.mrf.mxu2 }
  0x9b   :  { %v1310_v58 = vadd.f32 %v157_v57, %v1304_v55  ;;  %v162_v59 = vpop.f32.mrf.mxu3 }
  0x9c   :  { %v1313_v60 = vadd.f32 %v162_v59, %v1304_v55  ;;  %v149_v44 = vpop.f32.mrf.mxu0 }
  0x9d   :  { %v150_v45 = vadd.f32 %v149_v44, %v1304_v55 }
  0x9f   :  { %v154_v61 = vpop.f32.mrf.mxu1 }
  0xa0   :  { %v1316_v62 = vadd.f32 %v154_v61, %v1304_v55 }
  0xa2   :  { %v159_v63 = vpop.f32.mrf.mxu2 }
  0xa3   :  { %v1319_v0 = vadd.f32 %v159_v63, %v1304_v55  ;;  %v164_v1 = vpop.f32.mrf.mxu3 }
  0xa4   :  { %v1322_v2 = vadd.f32 %v164_v1, %v1304_v55 }
  0xa7   :  { %v176_v26 = vpop.f32.mrf.mxu1 }
  0xa8   :  { %v177_v29 = vadd.f32 %v176_v26, %v1330_v21 }
  0xaa   :  { %v260_v5 = vpop.f32.mrf.mxu2 }
  0xab   :  { %v277_v6 = vadd.f32 %v260_v5, %v148_v4  ;;  %v273_v7 = vpop.f32.mrf.mxu3 }
  0xac   :  { %v297_v24 = vadd.f32 %v1328_v15, %v273_v7 }
  0xad   :  { %v958_v8 = vmul.f32 -1.442695, %v277_v6 }
  0xaf   :  { %1043 = vpow2.f32 %v958_v8  ;;  %v178_v55 = vpop.f32.mrf.mxu1 }
  0xb2   :  { %v262_v9 = vpop.f32.mrf.mxu2 }
  0xb3   :  { %v275_v10 = vpop.f32.mrf.mxu3 }
  0xb4   :  { %v179_v10 = vadd.f32 %v178_v55, %v1330_v21 }
  0xb5   :  { %v1044_v11 = vpop.eup %1043 }
  0xb6   :  { %v281_v12 = vadd.f32 1.0, %v1044_v11 }
  0xb8   :  { %1045 = vrcp.f32 %v281_v12  ;;  %v293_v18 = vand.u32 2147483648, %v281_v12  ;;  %v291_v20 = vand.u32 2147483647, %v281_v12  ;;  %vm287_vm2 = vweird.f32 %v281_v12 }
  0xba   :  { %v294_v25 = vor.u32 1.1754944e-38, %v293_v18  ;;  %vm292_vm4 = vcmp.eq.f32.partialorder %v291_v20, 8.507059e+37 }
  0xbe   :  { %v1046_v13 = vpop.eup %1045 }
  0xbf   :  { %v283_v14 = vmul.f32 %v1046_v13, %v281_v12  ;;  %vm288_vm1 = vweird.f32 %v1046_v13 }
  0xc0   :  { %vm289_vm3 = vmor %vm287_vm2, %vm288_vm1 }
  0xc1   :  { %v284_v16 = vsub.f32 1.0, %v283_v14 }
  0xc3   :  { %v285_v19 = vmul.f32 %v1046_v13, %v284_v16 }
  0xc5   :  { %v286_v23 = vadd.f32 %v1046_v13, %v285_v19 }
  0xc7   :  { %v290_v27 = vsel %vm289_vm3, %v1046_v13, %v286_v23 }
  0xc8   :  { %v295_v30 = vsel %vm292_vm4, %v294_v25, %v290_v27 }
  0xc9   :  { %v298_v31 = vmul.f32 %v297_v24, %v295_v30  ;;  %v301_v35 = vsub.f32 1.0, %v295_v30  ;;  %v307_v37 = vmul.f32 0.0, %v295_v30 }
  0xcb   :  { %v299_v32 = vadd.f32 %v298_v31, %v177_v29 }
  0xcd   :  { %1047 = vtanh.f32 %v299_v32 }
  0xd3   :  { %v1048_v33 = vpop.eup %1047 }
  0xd4   :  { %303 = vrot.lane.b32.xlu0 %v1048_v33, %s1121_s4 }
 0x146   :  { %v304_v36 = vpop.permute.xlu0 %303 }
 0x147   :  { %v306_v39 = vmul.f32 %v304_v36, %v301_v35 }
 0x149   :  { %v1335_v40 = vadd.f32 %v307_v37, %v306_v39 }
 0x14b   :  { %v309_v41 = vpack.c.bf16 %v1335_v40, %v1335_v40 }
 0x14d   :  { %311 = vrot.lane.b32.xlu0 %v309_v41, %s1121_s4 }
 0x1bf   :  { %v312_v42 = vpop.permute.xlu0 %311 }
 0x1c0   :  { %959 = vmatmul.msk.bf16.vlgmr.msra.gmra.mxu2 %vm125_vm0, %v312_v42  ;;  %960 = vmatmul.msk.bf16.vlgmr.msra.gmra.mxu3 %vm125_vm0, %v312_v42 }
 0x1c1   :  { %450 = vmatpush.bf16.msra.mxu2 %v1192_v17  ;;  %463 = vmatpush.bf16.msra.mxu3 %v1202_v22 }
 0x1c5   :  { %451 = vmatpush.bf16.msra.mxu2 %v1213_v28  ;;  %464 = vmatpush.bf16.msra.mxu3 %v1227_v34 }
 0x1c9   :  { %452 = vmatpush.bf16.msra.mxu2 %v1235_v38  ;;  %465 = vmatpush.bf16.msra.mxu3 %v1246_v43 }
 0x1cd   :  { %453 = vmatpush.bf16.msra.mxu2 %v1250_v47  ;;  %466 = vmatpush.bf16.msra.mxu3 %v1259_v50 }
 0x243   :  { %v325_v46 = vpop.f32.mrf.mxu2  ;;  %v338_v48 = vpop.f32.mrf.mxu3 }
 0x244   :  { %v342_v49 = vadd.f32 %v325_v46, %v150_v45  ;;  %v362_v8 = vadd.f32 %v1328_v15, %v338_v48  ;;  %v181_v46 = vpop.f32.mrf.mxu1 }
 0x246   :  { %v961_v51 = vmul.f32 -1.442695, %v342_v49  ;;  %v182_v49 = vadd.f32 %v181_v46, %v1330_v21 }
 0x248   :  { %1049 = vpow2.f32 %v961_v51 }
 0x24b   :  { %v327_v52 = vpop.f32.mrf.mxu2  ;;  %v340_v53 = vpop.f32.mrf.mxu3 }
 0x24e   :  { %v1050_v54 = vpop.eup %1049 }
 0x24f   :  { %v346_v57 = vadd.f32 1.0, %v1050_v54 }
 0x251   :  { %1051 = vrcp.f32 %v346_v57  ;;  %v358_v1 = vand.u32 2147483648, %v346_v57  ;;  %v356_v4 = vand.u32 2147483647, %v346_v57  ;;  %vm352_vm6 = vweird.f32 %v346_v57 }
 0x253   :  { %v359_v6 = vor.u32 1.1754944e-38, %v358_v1  ;;  %vm357_vm8 = vcmp.eq.f32.partialorder %v356_v4, 8.507059e+37 }
 0x257   :  { %v1052_v59 = vpop.eup %1051 }
 0x258   :  { %v348_v61 = vmul.f32 %v1052_v59, %v346_v57  ;;  %vm353_vm5 = vweird.f32 %v1052_v59 }
 0x259   :  { %vm354_vm7 = vmor %vm352_vm6, %vm353_vm5 }
 0x25a   :  { %v349_v63 = vsub.f32 1.0, %v348_v61 }
 0x25c   :  { %v350_v3 = vmul.f32 %v1052_v59, %v349_v63 }
 0x25e   :  { %v351_v5 = vadd.f32 %v1052_v59, %v350_v3 }
 0x260   :  { %v355_v7 = vsel %vm354_vm7, %v1052_v59, %v351_v5 }
 0x261   :  { %v360_v9 = vsel %vm357_vm8, %v359_v6, %v355_v7 }
 0x262   :  { %v363_v11 = vmul.f32 %v362_v8, %v360_v9  ;;  %v366_v14 = vsub.f32 1.0, %v360_v9  ;;  %v372_v18 = vmul.f32 %v360_v9, %v1335_v40 }
 0x264   :  { %v364_v12 = vadd.f32 %v363_v11, %v179_v10 }
 0x266   :  { %1053 = vtanh.f32 %v364_v12 }
 0x26c   :  { %v1054_v13 = vpop.eup %1053 }
 0x26d   :  { %368 = vrot.lane.b32.xlu1 %v1054_v13, %s1121_s4 }
 0x2df   :  { %v369_v16 = vpop.permute.xlu1 %368 }
 0x2e0   :  { %v371_v19 = vmul.f32 %v369_v16, %v366_v14 }
 0x2e2   :  { %v1355_v20 = vadd.f32 %v372_v18, %v371_v19 }
 0x2e4   :  { %v374_v23 = vpack.c.bf16 %v1355_v20, %v1355_v20 }
 0x2e6   :  { %376 = vrot.lane.b32.xlu1 %v374_v23, %s1121_s4 }
 0x358   :  { %v377_v24 = vpop.permute.xlu1 %376 }
 0x359   :  { %962 = vmatmul.msk.bf16.vlgmr.msrb.gmra.mxu2 %vm125_vm0, %v377_v24  ;;  %963 = vmatmul.msk.bf16.vlgmr.msrb.gmra.mxu3 %vm125_vm0, %v377_v24 }
 0x35a   :  { %580 = vmatpush.bf16.msrb.mxu2 %v1192_v17  ;;  %593 = vmatpush.bf16.msrb.mxu3 %v1202_v22 }
 0x35e   :  { %581 = vmatpush.bf16.msrb.mxu2 %v1213_v28  ;;  %594 = vmatpush.bf16.msrb.mxu3 %v1227_v34 }
 0x362   :  { %582 = vmatpush.bf16.msrb.mxu2 %v1235_v38  ;;  %595 = vmatpush.bf16.msrb.mxu3 %v1246_v43 }
 0x366   :  { %583 = vmatpush.bf16.msrb.mxu2 %v1250_v47  ;;  %596 = vmatpush.bf16.msrb.mxu3 %v1259_v50 }
 0x3dc   :  { %v390_v25 = vpop.f32.mrf.mxu2  ;;  %v403_v26 = vpop.f32.mrf.mxu3 }
 0x3dd   :  { %v407_v27 = vadd.f32 %v390_v25, %v1307_v56  ;;  %v427_v48 = vadd.f32 %v1328_v15, %v403_v26 }
 0x3df   :  { %v964_v29 = vmul.f32 -1.442695, %v407_v27 }
 0x3e1   :  { %1055 = vpow2.f32 %v964_v29 }
 0x3e4   :  { %v392_v30 = vpop.f32.mrf.mxu2  ;;  %v405_v31 = vpop.f32.mrf.mxu3 }
 0x3e7   :  { %v1056_v32 = vpop.eup %1055 }
 0x3e8   :  { %v411_v33 = vadd.f32 1.0, %v1056_v32 }
 0x3ea   :  { %1057 = vrcp.f32 %v411_v33  ;;  %v423_v39 = vand.u32 2147483648, %v411_v33  ;;  %v421_v42 = vand.u32 2147483647, %v411_v33  ;;  %vm417_vm10 = vweird.f32 %v411_v33 }
 0x3ec   :  { %v424_v45 = vor.u32 1.1754944e-38, %v423_v39  ;;  %vm422_vm12 = vcmp.eq.f32.partialorder %v421_v42, 8.507059e+37 }
 0x3f0   :  { %v1058_v35 = vpop.eup %1057 }
 0x3f1   :  { %v413_v36 = vmul.f32 %v1058_v35, %v411_v33  ;;  %vm418_vm9 = vweird.f32 %v1058_v35 }
 0x3f2   :  { %vm419_vm11 = vmor %vm417_vm10, %vm418_vm9 }
 0x3f3   :  { %v414_v37 = vsub.f32 1.0, %v413_v36 }
 0x3f5   :  { %v415_v41 = vmul.f32 %v1058_v35, %v414_v37 }
 0x3f7   :  { %v416_v44 = vadd.f32 %v1058_v35, %v415_v41 }
 0x3f9   :  { %v420_v56 = vsel %vm419_vm11, %v1058_v35, %v416_v44 }
 0x3fa   :  { %v425_v51 = vsel %vm422_vm12, %v424_v45, %v420_v56 }
 0x3fb   :  { %v428_v52 = vmul.f32 %v427_v48, %v425_v51  ;;  %v431_v57 = vsub.f32 1.0, %v425_v51  ;;  %v437_v61 = vmul.f32 %v425_v51, %v1355_v20 }
 0x3fd   :  { %v429_v53 = vadd.f32 %v428_v52, %v182_v49 }
 0x3ff   :  { %1059 = vtanh.f32 %v429_v53 }
 0x405   :  { %v1060_v54 = vpop.eup %1059 }
 0x406   :  { %433 = vrot.lane.b32.xlu2 %v1060_v54, %s1121_s4 }
 0x460   :  { %v434_v59 = vpop.permute.xlu2 %433 }
 0x461   :  { %v436_v63 = vmul.f32 %v434_v59, %v431_v57 }
 0x463   :  { %v1375_v1 = vadd.f32 %v437_v61, %v436_v63 }
 0x465   :  { %v439_v3 = vpack.c.bf16 %v1375_v1, %v1375_v1 }
 0x467   :  { %441 = vrot.lane.b32.xlu2 %v439_v3, %s1121_s4 }
 0x4c1   :  { %v442_v4 = vpop.permute.xlu2 %441 }
 0x4c2   :  { %965 = vmatmul.msk.bf16.vlgmr.msra.gmra.mxu2 %vm125_vm0, %v442_v4  ;;  %966 = vmatmul.msk.bf16.vlgmr.msra.gmra.mxu3 %vm125_vm0, %v442_v4 }
 0x4c3   :  { %710 = vmatpush.bf16.msra.mxu2 %v1192_v17  ;;  %723 = vmatpush.bf16.msra.mxu3 %v1202_v22 }
 0x4c7   :  { %711 = vmatpush.bf16.msra.mxu2 %v1213_v28  ;;  %724 = vmatpush.bf16.msra.mxu3 %v1227_v34 }
 0x4cb   :  { %712 = vmatpush.bf16.msra.mxu2 %v1235_v38  ;;  %725 = vmatpush.bf16.msra.mxu3 %v1246_v43 }
 0x4cf   :  { %713 = vmatpush.bf16.msra.mxu2 %v1250_v47  ;;  %726 = vmatpush.bf16.msra.mxu3 %v1259_v50  ;;  %v183_v50 = vpop.f32.mrf.mxu1 }
 0x4d0   :  { %v184_v16 = vadd.f32 %v183_v50, %v1330_v21 }
 0x4d7   :  { %v186_v32 = vpop.f32.mrf.mxu1 }
 0x4d8   :  { %v187_v3 = vadd.f32 %v186_v32, %v1330_v21 }
 0x4df   :  { %v1402_v33 = vpop.f32.mrf.mxu1 }
 0x4e7   :  { %v1404_v35 = vpop.f32.mrf.mxu1 }
 0x4ef   :  { %v1406_v36 = vpop.f32.mrf.mxu1 }
 0x545   :  { %v455_v5 = vpop.f32.mrf.mxu2  ;;  %v468_v55 = vpop.f32.mrf.mxu3 }
 0x546   :  { %v472_v6 = vadd.f32 %v455_v5, %v1316_v62  ;;  %v492_v13 = vadd.f32 %v1328_v15, %v468_v55 }
 0x548   :  { %v967_v7 = vmul.f32 -1.442695, %v472_v6 }
 0x54a   :  { %1061 = vpow2.f32 %v967_v7 }
 0x54d   :  { %v457_v17 = vpop.f32.mrf.mxu2  ;;  %v470_v22 = vpop.f32.mrf.mxu3 }
 0x550   :  { %v1062_v8 = vpop.eup %1061 }
 0x551   :  { %v476_v28 = vadd.f32 1.0, %v1062_v8 }
 0x553   :  { %1063 = vrcp.f32 %v476_v28  ;;  %v488_v10 = vand.u32 2147483648, %v476_v28  ;;  %v486_v47 = vand.u32 2147483647, %v476_v28  ;;  %vm482_vm14 = vweird.f32 %v476_v28 }
 0x555   :  { %v489_v12 = vor.u32 1.1754944e-38, %v488_v10  ;;  %vm487_vm1 = vcmp.eq.f32.partialorder %v486_v47, 8.507059e+37 }
 0x559   :  { %v1064_v34 = vpop.eup %1063 }
 0x55a   :  { %v478_v9 = vmul.f32 %v1064_v34, %v476_v28  ;;  %vm483_vm13 = vweird.f32 %v1064_v34 }
 0x55b   :  { %vm484_vm15 = vmor %vm482_vm14, %vm483_vm13 }
 0x55c   :  { %v479_v38 = vsub.f32 1.0, %v478_v9 }
 0x55e   :  { %v480_v43 = vmul.f32 %v1064_v34, %v479_v38 }
 0x560   :  { %v481_v11 = vadd.f32 %v1064_v34, %v480_v43 }
 0x562   :  { %v485_v62 = vsel %vm484_vm15, %v1064_v34, %v481_v11 }
 0x563   :  { %v490_v14 = vsel %vm487_vm1, %v489_v12, %v485_v62 }
 0x564   :  { %v493_v18 = vmul.f32 %v492_v13, %v490_v14  ;;  %v496_v24 = vsub.f32 1.0, %v490_v14  ;;  %v502_v26 = vmul.f32 %v490_v14, %v1375_v1 }
 0x566   :  { %v494_v19 = vadd.f32 %v493_v18, %v184_v16 }
 0x568   :  { %1065 = vtanh.f32 %v494_v19 }
 0x56e   :  { %v1066_v23 = vpop.eup %1065 }
 0x56f   :  { %498 = vrot.lane.b32.xlu0 %v1066_v23, %s1121_s4 }
 0x5e1   :  { %v499_v25 = vpop.permute.xlu0 %498 }
 0x5e2   :  { %v501_v27 = vmul.f32 %v499_v25, %v496_v24 }
 0x5e4   :  { %v1395_v29 = vadd.f32 %v502_v26, %v501_v27  ;;  %v189_v27 = vadd.f32 %v1402_v33, %v1330_v21 }
 0x5e6   :  { %v504_v30 = vpack.c.bf16 %v1395_v29, %v1395_v29 }
 0x5e8   :  { %506 = vrot.lane.b32.xlu1 %v504_v30, %s1121_s4 }
 0x65a   :  { %v507_v31 = vpop.permute.xlu1 %506 }
 0x65b   :  { %968 = vmatmul.msk.bf16.vlgmr.msrb.gmra.mxu0 %vm125_vm0, %v507_v31  ;;  %969 = vmatmul.msk.bf16.vlgmr.msra.gmra.mxu1 %vm125_vm0, %v507_v31 }
 0x6d8   :  { %v520_v37 = vpop.f32.mrf.mxu0  ;;  %v533_v39 = vpop.f32.mrf.mxu1 }
 0x6d9   :  { %v537_v41 = vadd.f32 %v520_v37, %v1310_v58  ;;  %v557_v58 = vadd.f32 %v1328_v15, %v533_v39 }
 0x6db   :  { %v970_v42 = vmul.f32 -1.442695, %v537_v41 }
 0x6dd   :  { %1067 = vpow2.f32 %v970_v42 }
 0x6e0   :  { %v522_v44 = vpop.f32.mrf.mxu0  ;;  %v535_v45 = vpop.f32.mrf.mxu1 }
 0x6e3   :  { %v1068_v46 = vpop.eup %1067 }
 0x6e4   :  { %v541_v56 = vadd.f32 1.0, %v1068_v46  ;;  %v764_v46 = vpack.c.bf16 %v1355_v20, %v1335_v40  ;;  %v1020_v40 = vld [vmem:[%s1503_s5] sm:$0xff] }
 0x6e6   :  { %1069 = vrcp.f32 %v541_v56  ;;  %v553_v52 = vand.u32 2147483648, %v541_v56  ;;  %v551_v54 = vand.u32 2147483647, %v541_v56  ;;  %vm547_vm3 = vweird.f32 %v541_v56 }
 0x6e8   :  { %v554_v59 = vor.u32 1.1754944e-38, %v553_v52  ;;  %vm552_vm5 = vcmp.eq.f32.partialorder %v551_v54, 8.507059e+37 }
 0x6ec   :  { %v1070_v48 = vpop.eup %1069 }
 0x6ed   :  { %v543_v49 = vmul.f32 %v1070_v48, %v541_v56  ;;  %vm548_vm2 = vweird.f32 %v1070_v48  ;;  %v1023_v56 = vld [vmem:[%s1503_s5 + $0x18] sm:$0xff] }
 0x6ee   :  { %vm549_vm4 = vmor %vm547_vm3, %vm548_vm2  ;;  %832 = vmatpush.bf16.msrb.mxu0 %v1023_v56 }
 0x6ef   :  { %v544_v51 = vsub.f32 1.0, %v543_v49  ;;  %v1021_v49 = vld [vmem:[%s1503_s5 + $0x8] sm:$0xff] }
 0x6f1   :  { %v545_v53 = vmul.f32 %v1070_v48, %v544_v51 }
 0x6f3   :  { %v546_v57 = vadd.f32 %v1070_v48, %v545_v53 }
 0x6f5   :  { %v550_v61 = vsel %vm549_vm4, %v1070_v48, %v546_v57  ;;  %v1022_v48 = vld [vmem:[%s1503_s5 + $0x10] sm:$0xff] }
 0x6f6   :  { %v555_v63 = vsel %vm552_vm5, %v554_v59, %v550_v61  ;;  %833 = vmatpush.bf16.msrb.mxu0 %v1022_v48 }
 0x6f7   :  { %v558_v4 = vmul.f32 %v557_v58, %v555_v63  ;;  %v561_v6 = vsub.f32 1.0, %v555_v63  ;;  %v567_v17 = vmul.f32 %v555_v63, %v1395_v29 }
 0x6f9   :  { %v559_v5 = vadd.f32 %v558_v4, %v187_v3  ;;  %v1445_v3 = vld [vmem:[%s1504_s6] ss:$0 sm:$0xff] }
 0x6fa   :  { %834 = vmatpush.bf16.msrb.mxu0 %v1021_v49 }
 0x6fb   :  { %1071 = vtanh.f32 %v559_v5 }
 0x6fe   :  { %835 = vmatpush.bf16.msrb.mxu0 %v1020_v40 }
 0x701   :  { %v1072_v55 = vpop.eup %1071 }
 0x702   :  { %563 = vrot.lane.b32.xlu2 %v1072_v55, %s1121_s4 }
 0x75c   :  { %v564_v7 = vpop.permute.xlu2 %563 }
 0x75d   :  { %v566_v22 = vmul.f32 %v564_v7, %v561_v6 }
 0x75f   :  { %v568_v8 = vadd.f32 %v567_v17, %v566_v22 }
 0x761   :  { %v569_v28 = vpack.c.bf16 %v568_v8, %v568_v8 }
 0x763   :  { %571 = vrot.lane.b32.xlu0 %v569_v28, %s1121_s4 }
 0x7d5   :  { %v572_v34 = vpop.permute.xlu0 %571 }
 0x7d6   :  { %971 = vmatmul.msk.bf16.vlgmr.msrb.gmra.mxu2 %vm125_vm0, %v572_v34  ;;  %972 = vmatmul.msk.bf16.vlgmr.msrb.gmra.mxu3 %vm125_vm0, %v572_v34 }
 0x859   :  { %v585_v9 = vpop.f32.mrf.mxu2  ;;  %v598_v38 = vpop.f32.mrf.mxu3 }
 0x85a   :  { %v602_v10 = vadd.f32 %v585_v9, %v1319_v0  ;;  %v622_v0 = vadd.f32 %v1328_v15, %v598_v38 }
 0x85c   :  { %v973_v43 = vmul.f32 -1.442695, %v602_v10 }
 0x85e   :  { %1073 = vpow2.f32 %v973_v43 }
 0x861   :  { %v587_v47 = vpop.f32.mrf.mxu2  ;;  %v600_v11 = vpop.f32.mrf.mxu3 }
 0x862   :  { %v192_v47 = vadd.f32 %v1404_v35, %v1330_v21 }
 0x864   :  { %v1074_v50 = vpop.eup %1073 }
 0x865   :  { %v606_v12 = vadd.f32 1.0, %v1074_v50 }
 0x867   :  { %1075 = vrcp.f32 %v606_v12  ;;  %v618_v16 = vand.u32 2147483648, %v606_v12  ;;  %v616_v19 = vand.u32 2147483647, %v606_v12  ;;  %vm612_vm7 = vweird.f32 %v606_v12 }
 0x869   :  { %v619_v24 = vor.u32 1.1754944e-38, %v618_v16  ;;  %vm617_vm9 = vcmp.eq.f32.partialorder %v616_v19, 8.507059e+37 }
 0x86d   :  { %v1076_v62 = vpop.eup %1075 }
 0x86e   :  { %v608_v13 = vmul.f32 %v1076_v62, %v606_v12  ;;  %vm613_vm6 = vweird.f32 %v1076_v62 }
 0x86f   :  { %vm614_vm8 = vmor %vm612_vm7, %vm613_vm6 }
 0x870   :  { %v609_v14 = vsub.f32 1.0, %v608_v13 }
 0x872   :  { %v610_v18 = vmul.f32 %v1076_v62, %v609_v14 }
 0x874   :  { %v611_v23 = vadd.f32 %v1076_v62, %v610_v18 }
 0x876   :  { %v615_v25 = vsel %vm614_vm8, %v1076_v62, %v611_v23  ;;  %v765_v23 = vpack.c.bf16 %v1395_v29, %v1375_v1 }
 0x877   :  { %v620_v26 = vsel %vm617_vm9, %v619_v24, %v615_v25 }
 0x878   :  { %v623_v30 = vmul.f32 %v622_v0, %v620_v26  ;;  %v626_v37 = vsub.f32 1.0, %v620_v26  ;;  %v632_v41 = vmul.f32 %v620_v26, %v568_v8 }
 0x87a   :  { %v624_v31 = vadd.f32 %v623_v30, %v189_v27 }
 0x87c   :  { %1077 = vtanh.f32 %v624_v31 }
 0x882   :  { %v1078_v32 = vpop.eup %1077 }
 0x883   :  { %628 = vrot.lane.b32.xlu1 %v1078_v32, %s1121_s4 }
 0x8f5   :  { %v629_v39 = vpop.permute.xlu1 %628 }
 0x8f6   :  { %v631_v42 = vmul.f32 %v629_v39, %v626_v37 }
 0x8f8   :  { %v633_v44 = vadd.f32 %v632_v41, %v631_v42 }
 0x8fa   :  { %v634_v45 = vpack.c.bf16 %v633_v44, %v633_v44  ;;  %v766_v33 = vpack.c.bf16 %v633_v44, %v568_v8 }
 0x8fc   :  { %636 = vrot.lane.b32.xlu2 %v634_v45, %s1121_s4 }
 0x904   :  { %784 = vrot.lane.b32.xlu2 %v764_v46, %s1121_s4 }
 0x90c   :  { %788 = vrot.lane.b32.xlu2 %v766_v33, %s1121_s4 }
 0x956   :  { %v637_v20 = vpop.permute.xlu2 %636 }
 0x957   :  { %974 = vmatmul.msk.bf16.vlgmr.msra.gmra.mxu0 %vm125_vm0, %v637_v20  ;;  %975 = vmatmul.msk.bf16.vlgmr.msrb.gmra.mxu1 %vm125_vm0, %v637_v20 }
 0x95e   :  { %v785_v51 = vpop.permute.xlu2 %784 }
 0x966   :  { %v789_v25 = vpop.permute.xlu2 %788 }
 0x967   :  { %996 = vmatmul.msk.bf16.vlgmr.msrb.gmra.mxu0 %vm125_vm0, %v785_v51 }
 0x9d4   :  { %v650_v52 = vpop.f32.mrf.mxu0  ;;  %v663_v53 = vpop.f32.mrf.mxu1 }
 0x9d5   :  { %v667_v54 = vadd.f32 %v650_v52, %v1313_v60  ;;  %v687_v10 = vadd.f32 %v1328_v15, %v663_v53 }
 0x9d7   :  { %v976_v57 = vmul.f32 -1.442695, %v667_v54 }
 0x9d9   :  { %1079 = vpow2.f32 %v976_v57 }
 0x9dc   :  { %v652_v59 = vpop.f32.mrf.mxu0  ;;  %v665_v61 = vpop.f32.mrf.mxu1 }
 0x9dd   :  { %v194_v59 = vadd.f32 %v1406_v36, %v1330_v21 }
 0x9df   :  { %v1080_v58 = vpop.eup %1079 }
 0x9e0   :  { %v671_v63 = vadd.f32 1.0, %v1080_v58 }
 0x9e2   :  { %1081 = vrcp.f32 %v671_v63  ;;  %v683_v7 = vand.u32 2147483648, %v671_v63  ;;  %v681_v8 = vand.u32 2147483647, %v671_v63  ;;  %vm677_vm11 = vweird.f32 %v671_v63 }
 0x9e4   :  { %v837_v4 = vpop.f32.mrf.mxu0  ;;  %v684_v9 = vor.u32 1.1754944e-38, %v683_v7  ;;  %vm682_vm13 = vcmp.eq.f32.partialorder %v681_v8, 8.507059e+37 }
 0x9e5   :  { %v838_v5 = vadd.f32 %v1445_v3, %v837_v4 }
 0x9e7   :  { %857 = vst [vmem:[%s1505_s7] sm:$0xff] %v838_v5 }
 0x9e8   :  { %v1082_v60 = vpop.eup %1081 }
 0x9e9   :  { %v673_v55 = vmul.f32 %v1082_v60, %v671_v63  ;;  %vm678_vm10 = vweird.f32 %v1082_v60 }
 0x9ea   :  { %vm679_vm12 = vmor %vm677_vm11, %vm678_vm10 }
 0x9eb   :  { %v674_v6 = vsub.f32 1.0, %v673_v55 }
 0x9ec   :  { %v839_v17 = vpop.f32.mrf.mxu0 }
 0x9ed   :  { %v675_v22 = vmul.f32 %v1082_v60, %v674_v6  ;;  %v840_v28 = vadd.f32 %v1445_v3, %v839_v17 }
 0x9ef   :  { %v676_v34 = vadd.f32 %v1082_v60, %v675_v22  ;;  %858 = vst [vmem:[%s1505_s7 + $0x8] sm:$0xff] %v840_v28 }
 0x9f1   :  { %v680_v38 = vsel %vm679_vm12, %v1082_v60, %v676_v34 }
 0x9f2   :  { %v685_v43 = vsel %vm682_vm13, %v684_v9, %v680_v38 }
 0x9f3   :  { %v688_v11 = vmul.f32 %v687_v10, %v685_v43  ;;  %v691_v62 = vsub.f32 1.0, %v685_v43  ;;  %v697_v14 = vmul.f32 %v685_v43, %v633_v44 }
 0x9f5   :  { %v689_v50 = vadd.f32 %v688_v11, %v192_v47 }
 0x9f7   :  { %1083 = vtanh.f32 %v689_v50 }
 0x9fd   :  { %v1084_v12 = vpop.eup %1083 }
 0x9fe   :  { %693 = vrot.lane.b32.xlu0 %v1084_v12, %s1121_s4 }
 0xa70   :  { %v694_v13 = vpop.permute.xlu0 %693 }
 0xa71   :  { %v696_v16 = vmul.f32 %v694_v13, %v691_v62 }
 0xa73   :  { %v698_v18 = vadd.f32 %v697_v14, %v696_v16 }
 0xa75   :  { %v699_v19 = vpack.c.bf16 %v698_v18, %v698_v18 }
 0xa77   :  { %701 = vrot.lane.b32.xlu1 %v699_v19, %s1121_s4 }
 0xa7f   :  { %786 = vrot.lane.b32.xlu1 %v765_v23, %s1121_s4 }
 0xae9   :  { %v702_v35 = vpop.permute.xlu1 %701 }
 0xaea   :  { %977 = vmatmul.msk.bf16.vlgmr.msra.gmra.mxu2 %vm125_vm0, %v702_v35  ;;  %978 = vmatmul.msk.bf16.vlgmr.msra.gmra.mxu3 %vm125_vm0, %v702_v35 }
 0xaf1   :  { %v787_v24 = vpop.permute.xlu1 %786 }
 0xaf2   :  { %997 = vmatmul.msk.bf16.gmra.mxu0 %vm125_vm0, %v787_v24 }
 0xb02   :  { %998 = vmatmul.msk.bf16.gmra.mxu0 %vm125_vm0, %v789_v25 }
 0xb6d   :  { %v715_v0 = vpop.f32.mrf.mxu2  ;;  %v728_v26 = vpop.f32.mrf.mxu3 }
 0xb6e   :  { %v732_v27 = vadd.f32 %v715_v0, %v1322_v2  ;;  %v752_v54 = vadd.f32 %v1328_v15, %v728_v26 }
 0xb6f   :  { %v842_v30 = vpop.f32.mrf.mxu0 }
 0xb70   :  { %v979_v31 = vmul.f32 -1.442695, %v732_v27  ;;  %v843_v1 = vadd.f32 %v1445_v3, %v842_v30 }
 0xb72   :  { %1085 = vpow2.f32 %v979_v31  ;;  %859 = vst [vmem:[%s1505_s7 + $0x10] sm:$0xff] %v843_v1 }
 0xb75   :  { %v717_v29 = vpop.f32.mrf.mxu2  ;;  %v730_v32 = vpop.f32.mrf.mxu3 }
 0xb77   :  { %v844_v37 = vpop.f32.mrf.mxu0 }
 0xb78   :  { %v1086_v39 = vpop.eup %1085  ;;  %v845_v41 = vadd.f32 %v1445_v3, %v844_v37 }
 0xb79   :  { %v736_v42 = vadd.f32 1.0, %v1086_v39 }
 0xb7a   :  { %860 = vst [vmem:[%s1505_s7 + $0x18] sm:$0xff] %v845_v41 }
 0xb7b   :  { %1087 = vrcp.f32 %v736_v42  ;;  %v748_v56 = vand.u32 2147483648, %v736_v42  ;;  %v746_v49 = vand.u32 2147483647, %v736_v42  ;;  %vm742_vm15 = vweird.f32 %v736_v42 }
 0xb7d   :  { %v749_v52 = vor.u32 1.1754944e-38, %v748_v56  ;;  %vm747_vm2 = vcmp.eq.f32.partialorder %v746_v49, 8.507059e+37 }
 0xb7f   :  { %v847_v2 = vpop.f32.mrf.mxu0 }
 0xb80   :  { %v848_v44 = vadd.f32 %v1445_v3, %v847_v2 }
 0xb81   :  { %v1088_v45 = vpop.eup %1087 }
 0xb82   :  { %v738_v46 = vmul.f32 %v1088_v45, %v736_v42  ;;  %861 = vst [vmem:[%s1505_s7 + $0x20] sm:$0xff] %v848_v44  ;;  %vm743_vm14 = vweird.f32 %v1088_v45 }
 0xb83   :  { %vm744_vm1 = vmor %vm742_vm15, %vm743_vm14 }
 0xb84   :  { %v739_v33 = vsub.f32 1.0, %v738_v46 }
 0xb86   :  { %v740_v48 = vmul.f32 %v1088_v45, %v739_v33 }
 0xb87   :  { %v849_v40 = vpop.f32.mrf.mxu0 }
 0xb88   :  { %v741_v20 = vadd.f32 %v1088_v45, %v740_v48  ;;  %v850_v51 = vadd.f32 %v1445_v3, %v849_v40 }
 0xb8a   :  { %v745_v53 = vsel %vm744_vm1, %v1088_v45, %v741_v20  ;;  %862 = vst [vmem:[%s1505_s7 + $0x28] sm:$0xff] %v850_v51 }
 0xb8b   :  { %v750_v57 = vsel %vm747_vm2, %v749_v52, %v745_v53 }
 0xb8c   :  { %v753_v61 = vmul.f32 %v752_v54, %v750_v57  ;;  %v756_v4 = vsub.f32 1.0, %v750_v57  ;;  %v762_v60 = vmul.f32 %v750_v57, %v698_v18 }
 0xb8e   :  { %v754_v58 = vadd.f32 %v753_v61, %v194_v59 }
 0xb90   :  { %1089 = vtanh.f32 %v754_v58 }
 0xb96   :  { %v1090_v63 = vpop.eup %1089 }
 0xb97   :  { %758 = vrot.lane.b32.xlu0 %v1090_v63, %s1121_s4 }
 0xc09   :  { %v759_v5 = vpop.permute.xlu0 %758 }
 0xc0a   :  { %v761_v55 = vmul.f32 %v759_v5, %v756_v4 }
 0xc0c   :  { %v763_v6 = vadd.f32 %v762_v60, %v761_v55 }
 0xc0e   :  { %v767_v15 = vpack.c.bf16 %v763_v6, %v698_v18 }
 0xc10   :  { %790 = vrot.lane.b32.xlu0 %v767_v15, %s1121_s4 }
 0xc82   :  { %v791_v7 = vpop.permute.xlu0 %790 }
 0xc83   :  { %999 = vmatmul.msk.bf16.gmra.mxu0 %vm125_vm0, %v791_v7 }
 0xd00   :  { %v852_v17 = vpop.f32.mrf.mxu0 }
 0xd01   :  { %v853_v21 = vadd.f32 %v1445_v3, %v852_v17 }
 0xd03   :  { %863 = vst [vmem:[%s1505_s7 + $0x30] sm:$0xff] %v853_v21 }
 0xd08   :  { %v854_v36 = vpop.f32.mrf.mxu0 }
 0xd09   :  { %v855_v22 = vadd.f32 %v1445_v3, %v854_v36 }
 0xd0b   :  { %864 = vst [vmem:[%s1505_s7 + $0x38] sm:$0xff] %v855_v22 }
 0xd0c   :  { %869 = vsyncpa [#allocation3], 1 }

</bundles_post_ra>
